<compile_context>
chip_gen: v6e
topology: v6e:2x2x1
jax: 0.10.0
libtpu: 0.0.40
codegen_flags: <defaults>
</compile_context>

<pallas_src>
import functools

import jax
import jax.numpy as jnp
from jax.experimental import pallas as pl
from jax.experimental.pallas import tpu as pltpu


def _round_up(x, m):
    return ((x + m - 1) // m) * m


def _pad2d(x, rows, cols, dtype):
    out = jnp.zeros((rows, cols), dtype)
    return out.at[: x.shape[0], : x.shape[1]].set(x.astype(dtype))


def _fused_weight(w_self_t, w_neigh_t, f_pad, f_out_pad):
    """Stack [W_self^T ; W_neigh^T] (zero-padded) -> (2*f_pad, f_out_pad) bf16."""
    ws = _pad2d(w_self_t, f_pad, f_out_pad, jnp.bfloat16)
    wn = _pad2d(w_neigh_t, f_pad, f_out_pad, jnp.bfloat16)
    return jnp.concatenate([ws, wn], axis=0)


def _sage_layer_kernel(a_ref, xs_ref, xd_ref, w_ref, b_ref, o_ref,
                       acc_ref, deg_ref, *, f_pad, apply_relu):
    """Grid = (dst tiles [parallel], src tiles [arbitrary, reduction-last])."""
    k = pl.program_id(1)

    @pl.when(k == 0)
    def _():
        acc_ref[...] = jnp.zeros_like(acc_ref)
        deg_ref[...] = jnp.zeros_like(deg_ref)

    a = a_ref[...]                                              # (tm, tk) bf16 {0,1}
    # Degree: per-tile row sum (XLU), accumulated alongside the MXU work.
    deg_ref[...] += jnp.sum(a.astype(jnp.float32), axis=-1, keepdims=True)
    # Neighbor SUM partial: bf16 MXU inputs, f32 accumulation.
    acc_ref[...] += jnp.dot(a, xs_ref[...], preferred_element_type=jnp.float32)

    @pl.when(k == pl.num_programs(1) - 1)
    def _():
        # Mean = sum * 1/deg (deg clamped to 1 reproduces DGL zero-neighbor -> 0).
        inv_deg = pl.reciprocal(jnp.maximum(deg_ref[...], 1.0), approx=True)
        h_neigh = (acc_ref[...] * inv_deg).astype(jnp.bfloat16)  # (tm, f_pad)
        # Static ref slices of the stacked weight -> two MXU dots, no concat
        # materialization in VMEM.
        out = jnp.dot(xd_ref[...], w_ref[:f_pad, :],
                      preferred_element_type=jnp.float32)
        out += jnp.dot(h_neigh, w_ref[f_pad:, :],
                       preferred_element_type=jnp.float32)
        out += b_ref[...]
        if apply_relu:
            out = jnp.maximum(out, 0.0)
        o_ref[...] = out.astype(o_ref.dtype)


def _sage_layer_padded(adj_p, x_p, w_fused, bias, *, tm, tk, apply_relu, out_dtype):
    """One SAGEConv(mean) layer on pre-padded inputs.

    adj_p:   (n_pad, n_pad)        bf16, adj_p[i, j] = 1 iff edge j -> i
    x_p:     (n_pad, f_pad)        bf16 node features (f_pad % 128 == 0)
    w_fused: (2*f_pad, f_out_pad)  bf16  [W_self^T ; W_neigh^T]
    bias:    (1, f_out_pad)        f32
    """
    n_pad, f_pad = x_p.shape
    two_f, f_out_pad = w_fused.shape
    grid = (n_pad // tm, n_pad // tk)

    kernel = functools.partial(_sage_layer_kernel, f_pad=f_pad,
                               apply_relu=apply_relu)

    grid_spec = pltpu.PrefetchScalarGridSpec(
        num_scalar_prefetch=0,
        grid=grid,
        in_specs=[
            pl.BlockSpec((tm, tk), lambda i, k: (i, k)),            # adjacency tile
            pl.BlockSpec((tk, f_pad), lambda i, k: (k, 0)),         # src features
            pl.BlockSpec((tm, f_pad), lambda i, k: (i, 0)),         # dst features
            pl.BlockSpec((two_f, f_out_pad), lambda i, k: (0, 0)),  # fused weight
            pl.BlockSpec((1, f_out_pad), lambda i, k: (0, 0)),      # bias
        ],
        out_specs=pl.BlockSpec((tm, f_out_pad), lambda i, k: (i, 0)),
        scratch_shapes=[
            pltpu.VMEM((tm, f_pad), jnp.float32),   # neighbor-sum accumulator
            pltpu.VMEM((tm, 1), jnp.float32),       # degree accumulator
        ],
    )

    return pl.pallas_call(
        kernel,
        out_shape=jax.ShapeDtypeStruct((n_pad, f_out_pad), out_dtype),
        grid_spec=grid_spec,
        compiler_params=pltpu.CompilerParams(
            dimension_semantics=("parallel", "arbitrary"),
            vmem_limit_bytes=32 * 1024 * 1024,
        ),
    )(adj_p, x_p, x_p, w_fused, bias)


def sage_forward(adj, x, params, *, tm_target=256, tk_target=512):
    """SAGE.forward: conv1 -> relu -> conv2.

    adj: (N, N) float 0/1 dense adjacency, adj[i, j] = 1 means edge j -> i
    x:   (N, F_in) float32 node features
    """
    n, in_f = x.shape
    hid = params["b1"].shape[-1]
    out_f = params["b2"].shape[-1]

    # --- tile / padding derivation (tm_target must be a power of two) ---
    tk = min(tk_target, _round_up(n, 128))       # src tile: lane-aligned (128)
    n_pad = _round_up(n, tk)
    tm = min(tm_target, n_pad)                   # dst tile: must divide n_pad
    while n_pad % tm != 0:
        tm //= 2

    f_in_pad = _round_up(in_f, 128)
    hid_pad = _round_up(hid, 128)
    out_pad = _round_up(out_f, 128)

    # --- pad + cast once, reused by both layers ---
    adj_p = _pad2d(adj, n_pad, n_pad, jnp.bfloat16)
    x_p = _pad2d(x, n_pad, f_in_pad, jnp.bfloat16)

    w1 = _fused_weight(params["w1_self_t"], params["w1_neigh_t"], f_in_pad, hid_pad)
    b1 = _pad2d(params["b1"], 1, hid_pad, jnp.float32)
    w2 = _fused_weight(params["w2_self_t"], params["w2_neigh_t"], hid_pad, out_pad)
    b2 = _pad2d(params["b2"], 1, out_pad, jnp.float32)

    # conv1 + relu (hidden kept bf16 to halve its HBM round-trip)
    h = _sage_layer_padded(adj_p, x_p, w1, b1, tm=tm, tk=tk,
                           apply_relu=True, out_dtype=jnp.bfloat16)
    # conv2
    out = _sage_layer_padded(adj_p, h, w2, b2, tm=tm, tk=tk,
                             apply_relu=False, out_dtype=jnp.float32)
    return out[:n, :out_f]


def sage_reference(adj, x, params):
    """Plain-JAX f32 reference of the same math."""
    def layer(a, h, w_self_t, w_neigh_t, b):
        deg = jnp.maximum(jnp.sum(a, axis=1, keepdims=True), 1.0)
        h_neigh = (a @ h) / deg
        return h @ w_self_t + h_neigh @ w_neigh_t + b

    h = jax.nn.relu(layer(adj, x, params["w1_self_t"], params["w1_neigh_t"],
                          params["b1"]))
    return layer(adj, h, params["w2_self_t"], params["w2_neigh_t"], params["b2"])


def init_params(key, in_feats, hid_feats, out_feats):
    """PyTorch nn.Linear weights are (out, in); stored transposed (in, out)."""
    ks = jax.random.split(key, 4)
    scale1 = 1.0 / jnp.sqrt(jnp.float32(in_feats))
    scale2 = 1.0 / jnp.sqrt(jnp.float32(hid_feats))
    return {
        "w1_self_t": jax.random.normal(ks[0], (in_feats, hid_feats), jnp.float32) * scale1,
        "w1_neigh_t": jax.random.normal(ks[1], (in_feats, hid_feats), jnp.float32) * scale1,
        "b1": jnp.zeros((1, hid_feats), jnp.float32),
        "w2_self_t": jax.random.normal(ks[2], (hid_feats, out_feats), jnp.float32) * scale2,
        "w2_neigh_t": jax.random.normal(ks[3], (hid_feats, out_feats), jnp.float32) * scale2,
        "b2": jnp.zeros((1, out_feats), jnp.float32),
    }


if __name__ == "__main__":
    key = jax.random.PRNGKey(0)
    k_graph, k_feat, k_param = jax.random.split(key, 3)

    # Small synthetic graph: N nodes, dense adjacency.
    N = 16
    in_feats, hid_feats, out_feats = 8, 32, 16

    adj = jax.random.bernoulli(k_graph, p=0.3, shape=(N, N)).astype(jnp.float32)
    x = jax.random.normal(k_feat, (N, in_feats), jnp.float32)
    params = init_params(k_param, in_feats, hid_feats, out_feats)

    out = sage_forward(adj, x, params)
    out = jax.block_until_ready(out)

    assert out.shape == (N, out_feats), out.shape
    assert jnp.all(jnp.isfinite(out))

    ref = sage_reference(adj, x, params)
    max_err = float(jnp.max(jnp.abs(out - ref)))
    assert jnp.allclose(out, ref, rtol=1e-1, atol=1e-1), max_err

    print("KERNEL_OK")
</pallas_src>

<mosaic_0001>
module attributes {stable_mosaic.version = 11 : i64} {
  func.func @_sage_layer_kernel(%arg0: i32, %arg1: i32, %arg2: memref<128x128xbf16, #tpu.memory_space<vmem>>, %arg3: memref<128x128xbf16, #tpu.memory_space<vmem>>, %arg4: memref<128x128xbf16, #tpu.memory_space<vmem>>, %arg5: memref<256x128xbf16, #tpu.memory_space<vmem>>, %arg6: memref<1x128xf32, #tpu.memory_space<vmem>>, %arg7: memref<128x128xbf16, #tpu.memory_space<vmem>>, %arg8: memref<128x128xf32, #tpu.memory_space<vmem>>, %arg9: memref<128x1xf32, #tpu.memory_space<vmem>>) attributes {dimension_semantics = [#tpu.dimension_semantics<parallel>, #tpu.dimension_semantics<arbitrary>], iteration_bounds = array<i64: 1, 1>, scalar_prefetch = 0 : i64, scratch_operands = 2 : i64, tpu.core_type = #tpu.core_type<tc>, window_params = [{transform_indices = @transform_0, window_bounds = array<i64: 128, 128>}, {transform_indices = @transform_1, window_bounds = array<i64: 128, 128>}, {transform_indices = @transform_2, window_bounds = array<i64: 128, 128>}, {pipeline_mode = #tpu.pipeline_mode<synchronous>, transform_indices = @transform_3, window_bounds = array<i64: 256, 128>}, {pipeline_mode = #tpu.pipeline_mode<synchronous>, transform_indices = @transform_4, window_bounds = array<i64: 1, 128>}, {transform_indices = @transform_5, window_bounds = array<i64: 128, 128>}]} {
    %c0_i32 = arith.constant 0 : i32
    %0 = arith.cmpi eq, %arg1, %c0_i32 : i32
    %1 = arith.extui %0 : i1 to i32
    %c0_i32_0 = arith.constant 0 : i32
    %2 = arith.cmpi ne, %1, %c0_i32_0 : i32
    scf.if %2 {
      %cst_15 = arith.constant 0.000000e+00 : f32
      %18 = vector.broadcast %cst_15 : f32 to vector<128x128xf32>
      %c0_16 = arith.constant 0 : index
      %c0_17 = arith.constant 0 : index
      %19 = vector.load %arg8[%c0_16, %c0_17] : memref<128x128xf32, #tpu.memory_space<vmem>>, vector<128x128xf32>
      tpu.vector_store %arg8[%c0_16, %c0_17], %18 {strides = array<i32>} : memref<128x128xf32, #tpu.memory_space<vmem>>, vector<128x128xf32>,
      %cst_18 = arith.constant 0.000000e+00 : f32
      %20 = vector.broadcast %cst_18 : f32 to vector<128x1xf32>
      %c0_19 = arith.constant 0 : index
      %c0_20 = arith.constant 0 : index
      %21 = vector.load %arg9[%c0_19, %c0_20] : memref<128x1xf32, #tpu.memory_space<vmem>>, vector<128x1xf32>
      tpu.vector_store %arg9[%c0_19, %c0_20], %20 {strides = array<i32>} : memref<128x1xf32, #tpu.memory_space<vmem>>, vector<128x1xf32>,
    } else {
    }
    %c0 = arith.constant 0 : index
    %c0_1 = arith.constant 0 : index
    %3 = vector.load %arg2[%c0, %c0_1] : memref<128x128xbf16, #tpu.memory_space<vmem>>, vector<128x128xbf16>
    %c0_2 = arith.constant 0 : index
    %c0_3 = arith.constant 0 : index
    %4 = vector.load %arg9[%c0_2, %c0_3] : memref<128x1xf32, #tpu.memory_space<vmem>>, vector<128x1xf32>
    %5 = arith.extf %3 : vector<128x128xbf16> to vector<128x128xf32>
    %cst = arith.constant dense<0.000000e+00> : vector<128xf32>
    %6 = vector.multi_reduction <add>, %5, %cst [1] : vector<128x128xf32> to vector<128xf32>
    %7 = vector.shape_cast %6 : vector<128xf32> to vector<128x1xf32>
    %8 = arith.addf %4, %7 : vector<128x1xf32>
    %c0_4 = arith.constant 0 : index
    %c0_5 = arith.constant 0 : index
    %9 = vector.load %arg9[%c0_4, %c0_5] : memref<128x1xf32, #tpu.memory_space<vmem>>, vector<128x1xf32>
    tpu.vector_store %arg9[%c0_4, %c0_5], %8 {strides = array<i32>} : memref<128x1xf32, #tpu.memory_space<vmem>>, vector<128x1xf32>,
    %c0_6 = arith.constant 0 : index
    %c0_7 = arith.constant 0 : index
    %10 = vector.load %arg8[%c0_6, %c0_7] : memref<128x128xf32, #tpu.memory_space<vmem>>, vector<128x128xf32>
    %c0_8 = arith.constant 0 : index
    %c0_9 = arith.constant 0 : index
    %11 = vector.load %arg3[%c0_8, %c0_9] : memref<128x128xbf16, #tpu.memory_space<vmem>>, vector<128x128xbf16>
    %cst_10 = arith.constant dense<0.000000e+00> : vector<128x128xf32>
    %12 = tpu.matmul %3, %11, %cst_10 {dimension_numbers = #tpu.dot_dimension_numbers<[1], [0], [0], [1], [0, 0, 1, 1], [], []>} : vector<128x128xbf16>, vector<128x128xbf16>, vector<128x128xf32> -> vector<128x128xf32>
    %13 = arith.addf %10, %12 : vector<128x128xf32>
    %c0_11 = arith.constant 0 : index
    %c0_12 = arith.constant 0 : index
    %14 = vector.load %arg8[%c0_11, %c0_12] : memref<128x128xf32, #tpu.memory_space<vmem>>, vector<128x128xf32>
    tpu.vector_store %arg8[%c0_11, %c0_12], %13 {strides = array<i32>} : memref<128x128xf32, #tpu.memory_space<vmem>>, vector<128x128xf32>,
    %c0_i32_13 = arith.constant 0 : i32
    %15 = arith.cmpi eq, %arg1, %c0_i32_13 : i32
    %16 = arith.extui %15 : i1 to i32
    %c0_i32_14 = arith.constant 0 : i32
    %17 = arith.cmpi ne, %16, %c0_i32_14 : i32
    scf.if %17 {
      %c0_15 = arith.constant 0 : index
      %c0_16 = arith.constant 0 : index
      %18 = vector.load %arg9[%c0_15, %c0_16] : memref<128x1xf32, #tpu.memory_space<vmem>>, vector<128x1xf32>
      %cst_17 = arith.constant 1.000000e+00 : f32
      %19 = vector.broadcast %cst_17 : f32 to vector<128x1xf32>
      %20 = arith.maximumf %18, %19 : vector<128x1xf32>
      %21 = tpu.reciprocal %20 {approx = true} : vector<128x1xf32> -> vector<128x1xf32>
      %c0_18 = arith.constant 0 : index
      %c0_19 = arith.constant 0 : index
      %22 = vector.load %arg8[%c0_18, %c0_19] : memref<128x128xf32, #tpu.memory_space<vmem>>, vector<128x128xf32>
      %23 = vector.broadcast %21 : vector<128x1xf32> to vector<128x128xf32>
      %24 = arith.mulf %22, %23 : vector<128x128xf32>
      %25 = arith.truncf %24 : vector<128x128xf32> to vector<128x128xbf16>
      %c0_20 = arith.constant 0 : index
      %c0_21 = arith.constant 0 : index
      %26 = vector.load %arg4[%c0_20, %c0_21] : memref<128x128xbf16, #tpu.memory_space<vmem>>, vector<128x128xbf16>
      %c0_22 = arith.constant 0 : index
      %c0_23 = arith.constant 0 : index
      %27 = vector.load %arg5[%c0_22, %c0_23] : memref<256x128xbf16, #tpu.memory_space<vmem>>, vector<128x128xbf16>
      %cst_24 = arith.constant dense<0.000000e+00> : vector<128x128xf32>
      %28 = tpu.matmul %26, %27, %cst_24 {dimension_numbers = #tpu.dot_dimension_numbers<[1], [0], [0], [1], [0, 0, 1, 1], [], []>} : vector<128x128xbf16>, vector<128x128xbf16>, vector<128x128xf32> -> vector<128x128xf32>
      %c128 = arith.constant 128 : index
      %c0_25 = arith.constant 0 : index
      %29 = vector.load %arg5[%c128, %c0_25] : memref<256x128xbf16, #tpu.memory_space<vmem>>, vector<128x128xbf16>
      %cst_26 = arith.constant dense<0.000000e+00> : vector<128x128xf32>
      %30 = tpu.matmul %25, %29, %cst_26 {dimension_numbers = #tpu.dot_dimension_numbers<[1], [0], [0], [1], [0, 0, 1, 1], [], []>} : vector<128x128xbf16>, vector<128x128xbf16>, vector<128x128xf32> -> vector<128x128xf32>
      %31 = arith.addf %28, %30 : vector<128x128xf32>
      %c0_27 = arith.constant 0 : index
      %c0_28 = arith.constant 0 : index
      %32 = vector.load %arg6[%c0_27, %c0_28] : memref<1x128xf32, #tpu.memory_space<vmem>>, vector<1x128xf32>
      %33 = vector.broadcast %32 : vector<1x128xf32> to vector<128x128xf32>
      %34 = arith.addf %31, %33 : vector<128x128xf32>
      %cst_29 = arith.constant 0.000000e+00 : f32
      %35 = vector.broadcast %cst_29 : f32 to vector<128x128xf32>
      %36 = arith.maximumf %34, %35 : vector<128x128xf32>
      %37 = arith.truncf %36 : vector<128x128xf32> to vector<128x128xbf16>
      %c0_30 = arith.constant 0 : index
      %c0_31 = arith.constant 0 : index
      %38 = vector.load %arg7[%c0_30, %c0_31] : memref<128x128xbf16, #tpu.memory_space<vmem>>, vector<128x128xbf16>
      tpu.vector_store %arg7[%c0_30, %c0_31], %37 {strides = array<i32>} : memref<128x128xbf16, #tpu.memory_space<vmem>>, vector<128x128xbf16>,
    } else {
    }
    return
  }
  func.func @transform_0(%arg0: i32, %arg1: i32) -> (i32, i32) {
    %c0_i32 = arith.constant 0 : i32
    return %arg0, %arg1 : i32, i32
  }
  func.func @transform_1(%arg0: i32, %arg1: i32) -> (i32, i32) {
    %c0_i32 = arith.constant 0 : i32
    %c0_i32_0 = arith.constant 0 : i32
    return %arg1, %c0_i32 : i32, i32
  }
  func.func @transform_2(%arg0: i32, %arg1: i32) -> (i32, i32) {
    %c0_i32 = arith.constant 0 : i32
    %c0_i32_0 = arith.constant 0 : i32
    return %arg0, %c0_i32 : i32, i32
  }
  func.func @transform_3(%arg0: i32, %arg1: i32) -> (i32, i32) {
    %c0_i32 = arith.constant 0 : i32
    %c0_i32_0 = arith.constant 0 : i32
    %c0_i32_1 = arith.constant 0 : i32
    return %c0_i32, %c0_i32_0 : i32, i32
  }
  func.func @transform_4(%arg0: i32, %arg1: i32) -> (i32, i32) {
    %c0_i32 = arith.constant 0 : i32
    %c0_i32_0 = arith.constant 0 : i32
    %c0_i32_1 = arith.constant 0 : i32
    return %c0_i32, %c0_i32_0 : i32, i32
  }
  func.func @transform_5(%arg0: i32, %arg1: i32) -> (i32, i32) {
    %c0_i32 = arith.constant 0 : i32
    %c0_i32_0 = arith.constant 0 : i32
    return %arg0, %c0_i32 : i32, i32
  }
}

</mosaic_0001>

<bundles_post_ra>
// kernel: tpu_custom_call.1
= control target key start
LH: loop header
LB: loop body
LE: loop exit
PB: predicated region body
PF: predicated region fallthrough
CT: control target
= control target key end

     0   :  { %10 = vsyncpa [#allocation5], 0  ;;  %s1833_s0 = inlined_call_operand.hbm [shape: bf16[128,128], index: 0, kind: input, shape index: {}]   ;;  %s1834_s1 = inlined_call_operand.hbm [shape: bf16[128,128], index: 1, kind: input, shape index: {}]   ;;  %s1835_s2 = inlined_call_operand.hbm [shape: bf16[128,128], index: 2, kind: input, shape index: {}]   ;;  %s1836_s3 = inlined_call_operand.hbm [shape: bf16[256,128], index: 3, kind: input, shape index: {}]   ;;  %s1837_s4 = inlined_call_operand.vmem [shape: f32[1,128], index: 4, kind: input, shape index: {}]   ;;  %s1838_s5 = inlined_call_operand.hbm [shape: bf16[128,128], index: 5, kind: output, shape index: {}]  }
   0x1   :  { %11 = vsyncpa [#allocation8], 0 }
   0x2   :  { %12 = vsyncpa [#allocation11], 0 }
   0x3   :  { %13 = vsyncpa [#allocation6], 0  ;;  %s1658_s18 = smov [#allocation7]   ;;  %s1659_s20 = smov [#allocation4]  }
   0x4   :  { %s31_s19 = sshll.u32 %s1658_s18, 4  ;;  %s19_s21 = sshll.u32 %s1659_s20, 4  ;;  %s32_s19 = int_to_ptr.vmem [resolvable:$true] %s31_s19  ;;  %s20_s21 = int_to_ptr.vmem [resolvable:$true] %s19_s21 }
   0x5   :  { %s1558_s22 = scalar_lea.vmem %s32_s19, 1024  ;;  %p1563_p1 = scmp.lt.s32.totalorder %s32_s19, %s32_s19 }
   0x6   :  { %p1559_p0 = scmp.ne.s32.totalorder %s32_s19, %s1558_s22  ;;  %p1564_p2 = scmp.lt.s32.totalorder %s1558_s22, %s1558_s22 }
   0x8   :  { %p1565_p3 = por %p1564_p2, %p1563_p1 }
   0xa   :  { %p1566_p4 = pnand %p1565_p3, %p1559_p0 }
   0xc   :  { %1569 = shalt.err (!%p1566_p4)
}
   0xd   :  { %s1660_s23 = smov 64   ;;  %s1661_s24 = smov 4  }
   0xe   :  { %37 = dma.hbm_to_vmem [thread:$0]  %s1834_s1, 1024, %s32_s19, [#allocation8], %s1660_s23, %s1660_s23, %s1661_s24  }
   0xf   :  { %s1578_s27 = scalar_lea.vmem %s20_s21, 1024  ;;  %p1583_p6 = scmp.lt.s32.totalorder %s20_s21, %s20_s21 }
  0x10   :  { %p1579_p5 = scmp.ne.s32.totalorder %s20_s21, %s1578_s27  ;;  %p1584_p7 = scmp.lt.s32.totalorder %s1578_s27, %s1578_s27 }
  0x12   :  { %p1585_p8 = por %p1584_p7, %p1583_p6 }
  0x14   :  { %p1586_p9 = pnand %p1585_p8, %p1579_p5 }
  0x16   :  { %1589 = shalt.err (!%p1586_p9)
}
  0x17   :  { %25 = dma.hbm_to_vmem [thread:$0]  %s1833_s0, 1024, %s20_s21, [#allocation5], %s1660_s23, %s1660_s23, %s1661_s24  }
  0x18   :  { %s1662_s30 = smov [#allocation9]   ;;  %s1663_s7 = smov [#allocation10]  }
  0x19   :  { %s43_s6 = sshll.u32 %s1662_s30, 4  ;;  %s55_s8 = sshll.u32 %s1663_s7, 4  ;;  %s44_s6 = int_to_ptr.vmem [resolvable:$true] %s43_s6  ;;  %s56_s8 = int_to_ptr.vmem [resolvable:$true] %s55_s8 }
  0x1a   :  { %s1598_s1 = scalar_lea.vmem %s44_s6, 1024  ;;  %p1603_p11 = scmp.lt.s32.totalorder %s44_s6, %s44_s6 }
  0x1b   :  { %p1599_p10 = scmp.ne.s32.totalorder %s44_s6, %s1598_s1  ;;  %p1604_p12 = scmp.lt.s32.totalorder %s1598_s1, %s1598_s1 }
  0x1d   :  { %p1605_p13 = por %p1604_p12, %p1603_p11 }
  0x1f   :  { %p1606_p0 = pnand %p1605_p13, %p1599_p10 }
  0x21   :  { %1609 = shalt.err (!%p1606_p0)
}
  0x22   :  { %49 = dma.hbm_to_vmem [thread:$0]  %s1835_s2, 1024, %s44_s6, [#allocation8], %s1660_s23, %s1660_s23, %s1661_s24  }
  0x23   :  { %s1618_s0 = scalar_lea.vmem %s56_s8, 2048  ;;  %p1623_p2 = scmp.lt.s32.totalorder %s56_s8, %s56_s8 }
  0x24   :  { %p1619_p1 = scmp.ne.s32.totalorder %s56_s8, %s1618_s0  ;;  %p1624_p3 = scmp.lt.s32.totalorder %s1618_s0, %s1618_s0 }
  0x26   :  { %p1625_p4 = por %p1624_p3, %p1623_p2 }
  0x28   :  { %p1626_p5 = pnand %p1625_p4, %p1619_p1 }
  0x2a   :  { %1629 = shalt.err (!%p1626_p5)
}
  0x2b   :  { %61 = dma.hbm_to_vmem [thread:$0]  %s1836_s3, 2048, %s56_s8, [#allocation11], %s1660_s23, %s1660_s23, %s1661_s24  }
  0x2c   :  { %1650 = dma.done.wait [#allocation5], 1024  }
  0x2d   :  { %1651 = vsyncadd [#allocation5], 4294966272 }
  0x2e   :  { %1652 = dma.done.wait [#allocation8], 2048  }
  0x2f   :  { %1653 = vsyncadd [#allocation8], 4294965248 }
  0x30   :  { %1654 = dma.done.wait [#allocation11], 2048  }
  0x31   :  { %1655 = vsyncadd [#allocation11], 4294965248  ;;  %vm97_vm0 = vcmask 7168   ;;  %v1664_v0 = vmov 0.0   ;;  %v1737_v1 = vld [vmem:[#allocation4 + $0x8] sm:$0xff]   ;;  %v114_v2 = vld [vmem:[#allocation4] sm:$0xff]  }
  0x32   :  { %100 = vst.msk [vmem:[#allocation3 + $0x10] sm:$0xff] %vm97_vm0, %v1664_v0  ;;  %98 = vst.msk [vmem:[#allocation3] sm:$0xff] %vm97_vm0, %v1664_v0  ;;  %v148_v3 = vunpack.c.l.bf16 %v1737_v1  ;;  %v146_v4 = vunpack.c.l.bf16 %v114_v2  ;;  %v119_v5 = vld [vmem:[#allocation4 + $0x10] sm:$0xff]   ;;  %v149_v6 = vunpack.c.h.bf16 %v1737_v1  ;;  %v147_v7 = vunpack.c.h.bf16 %v114_v2  ;;  %v1477_v8 = vld [vmem:[#allocation7 + $0x38] sm:$0xff]   ;;  %1363 = vmatprep.mubr.bf16.mxu0 %v114_v2 }
  0x33   :  { %99 = vst.msk [vmem:[#allocation3 + $0x8] sm:$0xff] %vm97_vm0, %v1664_v0  ;;  %101 = vst.msk [vmem:[#allocation3 + $0x18] sm:$0xff] %vm97_vm0, %v1664_v0  ;;  %v1478_v9 = vld [vmem:[#allocation7 + $0x30] sm:$0xff]   ;;  %1347 = vmatprep.subr.bf16.mxu0 %v1477_v8  ;;  %v151_v10 = vunpack.c.h.bf16 %v119_v5  ;;  %v121_v11 = vld [vmem:[#allocation4 + $0x18] sm:$0xff]   ;;  %v150_v12 = vunpack.c.l.bf16 %v119_v5  ;;  %v1665_v33 = vmov 0  }
  0x34   :  { %102 = vst.msk [vmem:[#allocation3 + $0x20] sm:$0xff] %vm97_vm0, %v1664_v0  ;;  %103 = vst.msk [vmem:[#allocation3 + $0x28] sm:$0xff] %vm97_vm0, %v1664_v0  ;;  %166 = vadd.xlane.f32.xlu1 %v148_v3  ;;  %162 = vadd.xlane.f32.xlu0 %v146_v4  ;;  %v1479_v13 = vld [vmem:[#allocation7 + $0x28] sm:$0xff]   ;;  %v153_v14 = vunpack.c.h.bf16 %v121_v11  ;;  %v152_v15 = vunpack.c.l.bf16 %v121_v11  ;;  %v123_v16 = vld [vmem:[#allocation4 + $0x20] sm:$0xff]  }
  0x35   :  { %104 = vst.msk [vmem:[#allocation3 + $0x30] sm:$0xff] %vm97_vm0, %v1664_v0  ;;  %105 = vst.msk [vmem:[#allocation3 + $0x38] sm:$0xff] %vm97_vm0, %v1664_v0  ;;  %1348 = vmatpush3.bf16.msra.mxu0 %v1477_v8  ;;  %v1480_v17 = vld [vmem:[#allocation7 + $0x20] sm:$0xff]   ;;  %v155_v18 = vunpack.c.h.bf16 %v123_v16  ;;  %v154_v19 = vunpack.c.l.bf16 %v123_v16  ;;  %v125_v20 = vld [vmem:[#allocation4 + $0x28] sm:$0xff]   ;;  %1468 = vset.pattern.permute.xlu0 %v1665_v33 }
  0x36   :  { %106 = vst.msk [vmem:[#allocation3 + $0x40] sm:$0xff] %vm97_vm0, %v1664_v0  ;;  %107 = vst.msk [vmem:[#allocation3 + $0x48] sm:$0xff] %vm97_vm0, %v1664_v0  ;;  %1349 = vmatprep.subr.bf16.mxu0 %v1478_v9  ;;  %v1481_v21 = vld [vmem:[#allocation7 + $0x18] sm:$0xff]   ;;  %v127_v22 = vld [vmem:[#allocation4 + $0x30] sm:$0xff]   ;;  %v157_v23 = vunpack.c.h.bf16 %v125_v20  ;;  %v156_v24 = vunpack.c.l.bf16 %v125_v20  ;;  %1469 = vset.pattern.permute.xlu1 %v1665_v33 }
  0x37   :  { %108 = vst.msk [vmem:[#allocation3 + $0x50] sm:$0xff] %vm97_vm0, %v1664_v0  ;;  %109 = vst.msk [vmem:[#allocation3 + $0x58] sm:$0xff] %vm97_vm0, %v1664_v0  ;;  %v1482_v25 = vld [vmem:[#allocation7 + $0x10] sm:$0xff]   ;;  %v129_v26 = vld [vmem:[#allocation4 + $0x38] sm:$0xff]   ;;  %v159_v27 = vunpack.c.h.bf16 %v127_v22  ;;  %v158_v28 = vunpack.c.l.bf16 %v127_v22 }
  0x38   :  { %110 = vst.msk [vmem:[#allocation3 + $0x60] sm:$0xff] %vm97_vm0, %v1664_v0  ;;  %111 = vst.msk [vmem:[#allocation3 + $0x68] sm:$0xff] %vm97_vm0, %v1664_v0  ;;  %168 = vadd.xlane.f32.xlu1 %v149_v6  ;;  %164 = vadd.xlane.f32.xlu0 %v147_v7  ;;  %v1483_v29 = vld [vmem:[#allocation7 + $0x8] sm:$0xff]   ;;  %v161_v30 = vunpack.c.h.bf16 %v129_v26  ;;  %v160_v31 = vunpack.c.l.bf16 %v129_v26  ;;  %v1484_v32 = vld [vmem:[#allocation7] sm:$0xff]  }
  0x39   :  { %112 = vst.msk [vmem:[#allocation3 + $0x70] sm:$0xff] %vm97_vm0, %v1664_v0  ;;  %113 = vst.msk [vmem:[#allocation3 + $0x78] sm:$0xff] %vm97_vm0, %v1664_v0  ;;  %1350 = vmatpush3.bf16.msra.mxu0 %v1478_v9  ;;  %v1486_v34 = vld [vmem:[#allocation10 + $0x78] sm:$0xff]   ;;  %v1488_v36 = vld [vmem:[#allocation10 + $0x70] sm:$0xff]  }
  0x3a   :  { %1351 = vmatprep.subr.bf16.mxu0 %v1479_v13  ;;  %v1742_v35 = vld [vmem:[#allocation10 + $0x38] sm:$0xff]   ;;  %v1744_v37 = vld [vmem:[#allocation10 + $0x30] sm:$0xff]   ;;  %1379 = vmatprep.subr.bf16.mxu1 %v1486_v34  ;;  %v1490_v38 = vld [vmem:[#allocation10 + $0x68] sm:$0xff]  }
  0x3b   :  { %1380 = vmatpush3.bf16.msra.mxu1 %v1486_v34  ;;  %v1749_v39 = vld [vmem:[#allocation10 + $0x28] sm:$0xff]   ;;  %v1492_v40 = vld [vmem:[#allocation10 + $0x60] sm:$0xff]   ;;  %v132_v42 = vld [vmem:[#allocation3 + $0x10] sm:$0xff] }
  0x3c   :  { %172 = vadd.xlane.f32.xlu1 %v151_v10  ;;  %170 = vadd.xlane.f32.xlu0 %v150_v12  ;;  %v1754_v41 = vld [vmem:[#allocation10 + $0x20] sm:$0xff]   ;;  %v133_v48 = vld [vmem:[#allocation3 + $0x18] sm:$0xff]  ;;  %v131_v49 = vld [vmem:[#allocation3 + $0x8] sm:$0xff] }
  0x3d   :  { %1352 = vmatpush3.bf16.msra.mxu0 %v1479_v13  ;;  %1381 = vmatprep.subr.bf16.mxu1 %v1488_v36  ;;  %v130_v43 = vld [vmem:[#allocation3] sm:$0xff]  ;;  %v135_v54 = vld [vmem:[#allocation3 + $0x28] sm:$0xff]  ;;  %v137_v60 = vld [vmem:[#allocation3 + $0x38] sm:$0xff] }
  0x3e   :  { %1353 = vmatprep.subr.bf16.mxu0 %v1480_v17  ;;  %v134_v55 = vld [vmem:[#allocation3 + $0x20] sm:$0xff]  ;;  %v136_v61 = vld [vmem:[#allocation3 + $0x30] sm:$0xff] }
  0x3f   :  { %1382 = vmatpush3.bf16.msra.mxu1 %v1488_v36  ;;  %v138_v7 = vld [vmem:[#allocation3 + $0x40] sm:$0xff]  ;;  %v1496_v33 = vld [vmem:[#allocation10 + $0x50] sm:$0xff]  }
  0x40   :  { %176 = vadd.xlane.f32.xlu1 %v153_v14  ;;  %174 = vadd.xlane.f32.xlu0 %v152_v15  ;;  %v141_v15 = vld [vmem:[#allocation3 + $0x58] sm:$0xff]  ;;  %v1774_v34 = vld [vmem:[#allocation10 + $0x10] sm:$0xff]  }
  0x41   :  { %1354 = vmatpush3.bf16.msra.mxu0 %v1480_v17  ;;  %1383 = vmatprep.subr.bf16.mxu1 %v1490_v38 }
  0x42   :  { %1355 = vmatprep.subr.bf16.mxu0 %v1481_v21 }
  0x43   :  { %1384 = vmatpush3.bf16.msra.mxu1 %v1490_v38  ;;  %v145_v38 = vld [vmem:[#allocation3 + $0x78] sm:$0xff] }
  0x44   :  { %180 = vadd.xlane.f32.xlu1 %v155_v18  ;;  %178 = vadd.xlane.f32.xlu0 %v154_v19 }
  0x45   :  { %1356 = vmatpush3.bf16.msra.mxu0 %v1481_v21  ;;  %1385 = vmatprep.subr.bf16.mxu1 %v1492_v40 }
  0x46   :  { %1357 = vmatprep.subr.bf16.mxu0 %v1482_v25 }
  0x47   :  { %1386 = vmatpush3.bf16.msra.mxu1 %v1492_v40 }
  0x48   :  { %184 = vadd.xlane.f32.xlu1 %v157_v23  ;;  %182 = vadd.xlane.f32.xlu0 %v156_v24  ;;  %v1494_v23 = vld [vmem:[#allocation10 + $0x58] sm:$0xff]  }
  0x49   :  { %1358 = vmatpush3.bf16.msra.mxu0 %v1482_v25  ;;  %v1768_v24 = vld [vmem:[#allocation10 + $0x18] sm:$0xff]   ;;  %v143_v25 = vld [vmem:[#allocation3 + $0x68] sm:$0xff]  ;;  %1387 = vmatprep.subr.bf16.mxu1 %v1494_v23 }
  0x4a   :  { %1359 = vmatprep.subr.bf16.mxu0 %v1483_v29 }
  0x4b   :  { %1388 = vmatpush3.bf16.msra.mxu1 %v1494_v23 }
  0x4c   :  { %188 = vadd.xlane.f32.xlu1 %v159_v27  ;;  %186 = vadd.xlane.f32.xlu0 %v158_v28 }
  0x4d   :  { %1360 = vmatpush3.bf16.msra.mxu0 %v1483_v29  ;;  %1389 = vmatprep.subr.bf16.mxu1 %v1496_v33 }
  0x4e   :  { %1361 = vmatprep.subr.bf16.mxu0 %v1484_v32 }
  0x4f   :  { %1390 = vmatpush3.bf16.msra.mxu1 %v1496_v33 }
  0x50   :  { %192 = vadd.xlane.f32.xlu1 %v161_v30  ;;  %190 = vadd.xlane.f32.xlu0 %v160_v31 }
  0x51   :  { %1362 = vmatpush3.bf16.msra.mxu0 %v1484_v32 }
  0x52   :  { %1411 = vmatprep.subr.bf16.mxu0 %v1742_v35 }
  0x54   :  { %1364 = vmatmul.mubr.bf16.vlgmr.msra.gmra.mxu0 %v1737_v1 }
  0x55   :  { %1367 = vmatprep.mubr.bf16.mxu0 %v119_v5  ;;  %1412 = vmatpush3.bf16.msra.mxu0 %v1742_v35  ;;  %v139_v5 = vld [vmem:[#allocation3 + $0x48] sm:$0xff] }
  0x56   :  { %1413 = vmatprep.subr.bf16.mxu0 %v1744_v37 }
  0x59   :  { %1414 = vmatpush3.bf16.msra.mxu0 %v1744_v37 }
  0x5a   :  { %1415 = vmatprep.subr.bf16.mxu0 %v1749_v39 }
  0x5c   :  { %1368 = vmatmul.mubr.bf16.gmra.mxu0 %v121_v11 }
  0x5d   :  { %1371 = vmatprep.mubr.bf16.mxu0 %v123_v16  ;;  %1416 = vmatpush3.bf16.msra.mxu0 %v1749_v39  ;;  %v140_v16 = vld [vmem:[#allocation3 + $0x50] sm:$0xff] }
  0x5e   :  { %1417 = vmatprep.subr.bf16.mxu0 %v1754_v41 }
  0x61   :  { %1418 = vmatpush3.bf16.msra.mxu0 %v1754_v41 }
  0x62   :  { %1419 = vmatprep.subr.bf16.mxu0 %v1768_v24 }
  0x64   :  { %1372 = vmatmul.mubr.bf16.gmra.mxu0 %v125_v20 }
  0x65   :  { %1375 = vmatprep.mubr.bf16.mxu0 %v127_v22  ;;  %1420 = vmatpush3.bf16.msra.mxu0 %v1768_v24 }
  0x66   :  { %1421 = vmatprep.subr.bf16.mxu0 %v1774_v34 }
  0x69   :  { %1422 = vmatpush3.bf16.msra.mxu0 %v1774_v34 }
  0x6c   :  { %1376 = vmatmul.mubr.bf16.gmra.mxu0 %v129_v26  ;;  %v142_v26 = vld [vmem:[#allocation3 + $0x60] sm:$0xff] }
  0xbd   :  { %v167_v44 = vpop.xlane.xlu1 %166  ;;  %v163_v45 = vpop.xlane.xlu0 %162 }
  0xbe   :  { %v196_v46 = vadd.f32 %v167_v44, %v132_v42  ;;  %v194_v47 = vadd.f32 %v163_v45, %v130_v43  ;;  %v144_v42 = vld [vmem:[#allocation3 + $0x70] sm:$0xff] }
  0xc0   :  { %213 = vst.msk [vmem:[#allocation3 + $0x10] sm:$0xff] %vm97_vm0, %v196_v46  ;;  %211 = vst.msk [vmem:[#allocation3] sm:$0xff] %vm97_vm0, %v194_v47 }
  0xc1   :  { %v169_v50 = vpop.xlane.xlu1 %168  ;;  %v165_v51 = vpop.xlane.xlu0 %164 }
  0xc2   :  { %v197_v52 = vadd.f32 %v169_v50, %v133_v48  ;;  %v195_v53 = vadd.f32 %v165_v51, %v131_v49  ;;  %v1498_v50 = vld [vmem:[#allocation10 + $0x48] sm:$0xff]  }
  0xc3   :  { %v1780_v51 = vld [vmem:[#allocation10 + $0x8] sm:$0xff]   ;;  %1391 = vmatprep.subr.bf16.mxu1 %v1498_v50 }
  0xc4   :  { %214 = vst.msk [vmem:[#allocation3 + $0x18] sm:$0xff] %vm97_vm0, %v197_v52  ;;  %212 = vst.msk [vmem:[#allocation3 + $0x8] sm:$0xff] %vm97_vm0, %v195_v53  ;;  %1423 = vmatprep.subr.bf16.mxu0 %v1780_v51  ;;  %1392 = vmatpush3.bf16.msra.mxu1 %v1498_v50 }
  0xc5   :  { %v173_v56 = vpop.xlane.xlu1 %172  ;;  %v171_v57 = vpop.xlane.xlu0 %170  ;;  %1424 = vmatpush3.bf16.msra.mxu0 %v1780_v51 }
  0xc6   :  { %v199_v58 = vadd.f32 %v173_v56, %v135_v54  ;;  %v198_v59 = vadd.f32 %v171_v57, %v134_v55 }
  0xc7   :  { %v487_v62 = vld [vmem:[#allocation3] sm:$0xff]  ;;  %v489_v2 = vld [vmem:[#allocation3 + $0x10] sm:$0xff] }
  0xc8   :  { %216 = vst.msk [vmem:[#allocation3 + $0x28] sm:$0xff] %vm97_vm0, %v199_v58  ;;  %215 = vst.msk [vmem:[#allocation3 + $0x20] sm:$0xff] %vm97_vm0, %v198_v59  ;;  %v503_v63 = vmax.f32 %v487_v62, 1.0  ;;  %v505_v9 = vmax.f32 %v489_v2, 1.0  ;;  %v1500_v58 = vld [vmem:[#allocation10 + $0x40] sm:$0xff]   ;;  %v1503_v2 = vld [vmem:[#allocation9 + $0x8] sm:$0xff]  }
  0xc9   :  { %v177_v0 = vpop.xlane.xlu1 %176  ;;  %v175_v1 = vpop.xlane.xlu0 %174  ;;  %v1786_v59 = vld [vmem:[#allocation10] sm:$0xff]   ;;  %1393 = vmatprep.subr.bf16.mxu1 %v1500_v58 }
  0xca   :  { %v201_v3 = vadd.f32 %v177_v0, %v137_v60  ;;  %v200_v4 = vadd.f32 %v175_v1, %v136_v61  ;;  %1518 = vrcp.f32 %v503_v63  ;;  %1425 = vmatprep.subr.bf16.mxu0 %v1786_v59  ;;  %1394 = vmatpush3.bf16.msra.mxu1 %v1500_v58  ;;  %v1502_v1 = vld [vmem:[#allocation9] sm:$0xff]  }
  0xcb   :  { %v488_v6 = vld [vmem:[#allocation3 + $0x8] sm:$0xff]  ;;  %v490_v12 = vld [vmem:[#allocation3 + $0x18] sm:$0xff]  ;;  %1426 = vmatpush3.bf16.msra.mxu0 %v1786_v59  ;;  %1443 = vmatprep.subr.bf16.mxu1 %v1742_v35 }
  0xcc   :  { %218 = vst.msk [vmem:[#allocation3 + $0x38] sm:$0xff] %vm97_vm0, %v201_v3  ;;  %217 = vst.msk [vmem:[#allocation3 + $0x30] sm:$0xff] %vm97_vm0, %v200_v4  ;;  %v504_v8 = vmax.f32 %v488_v6, 1.0  ;;  %v506_v17 = vmax.f32 %v490_v12, 1.0  ;;  %1427 = vmatprep.mubr.bf16.mxu0 %v1502_v1 }
  0xcd   :  { %v181_v10 = vpop.xlane.xlu1 %180  ;;  %v179_v11 = vpop.xlane.xlu0 %178 }
  0xce   :  { %v203_v13 = vadd.f32 %v181_v10, %v139_v5  ;;  %1520 = vrcp.f32 %v504_v8  ;;  %v202_v14 = vadd.f32 %v179_v11, %v138_v7  ;;  %1428 = vmatmul.mubr.bf16.vlgmr.msra.gmra.mxu0 %v1503_v2 }
  0xcf   :  { %1522 = vrcp.f32 %v505_v9  ;;  %v491_v20 = vld [vmem:[#allocation3 + $0x20] sm:$0xff]  ;;  %v492_v30 = vld [vmem:[#allocation3 + $0x28] sm:$0xff] }
  0xd0   :  { %220 = vst.msk [vmem:[#allocation3 + $0x48] sm:$0xff] %vm97_vm0, %v203_v13  ;;  %219 = vst.msk [vmem:[#allocation3 + $0x40] sm:$0xff] %vm97_vm0, %v202_v14  ;;  %1524 = vrcp.f32 %v506_v17  ;;  %v507_v27 = vmax.f32 %v491_v20, 1.0  ;;  %v508_v44 = vmax.f32 %v492_v30, 1.0  ;;  %v1505_v20 = vld [vmem:[#allocation9 + $0x18] sm:$0xff]  }
  0xd1   :  { %v185_v18 = vpop.xlane.xlu1 %184  ;;  %v183_v19 = vpop.xlane.xlu0 %182 }
  0xd2   :  { %v205_v21 = vadd.f32 %v185_v18, %v141_v15  ;;  %v204_v22 = vadd.f32 %v183_v19, %v140_v16  ;;  %1526 = vrcp.f32 %v507_v27  ;;  %v1504_v19 = vld [vmem:[#allocation9 + $0x10] sm:$0xff]  }
  0xd3   :  { %v493_v47 = vld [vmem:[#allocation3 + $0x30] sm:$0xff]  ;;  %v494_v57 = vld [vmem:[#allocation3 + $0x38] sm:$0xff]  ;;  %1431 = vmatprep.mubr.bf16.mxu0 %v1504_v19 }
  0xd4   :  { %222 = vst.msk [vmem:[#allocation3 + $0x58] sm:$0xff] %vm97_vm0, %v205_v21  ;;  %221 = vst.msk [vmem:[#allocation3 + $0x50] sm:$0xff] %vm97_vm0, %v204_v22  ;;  %v509_v55 = vmax.f32 %v493_v47, 1.0  ;;  %v510_v62 = vmax.f32 %v494_v57, 1.0 }
  0xd5   :  { %v189_v28 = vpop.xlane.xlu1 %188  ;;  %v187_v29 = vpop.xlane.xlu0 %186 }
  0xd6   :  { %v207_v31 = vadd.f32 %v189_v28, %v143_v25  ;;  %v206_v32 = vadd.f32 %v187_v29, %v142_v26  ;;  %1432 = vmatmul.mubr.bf16.gmra.mxu0 %v1505_v20 }
  0xd7   :  { %v1519_v36 = vpop.eup %1518  ;;  %v496_v40 = vld [vmem:[#allocation3 + $0x48] sm:$0xff]  ;;  %v495_v0 = vld [vmem:[#allocation3 + $0x40] sm:$0xff] }
  0xd8   :  { %224 = vst.msk [vmem:[#allocation3 + $0x68] sm:$0xff] %vm97_vm0, %v207_v31  ;;  %553 = vperm.xlu0 %1468, %v1519_v36   ;;  %223 = vst.msk [vmem:[#allocation3 + $0x60] sm:$0xff] %vm97_vm0, %v206_v32  ;;  %v512_v43 = vmax.f32 %v496_v40, 1.0  ;;  %v511_v5 = vmax.f32 %v495_v0, 1.0 }
  0xd9   :  { %v193_v45 = vpop.xlane.xlu1 %192  ;;  %v191_v46 = vpop.xlane.xlu0 %190 }
  0xda   :  { %v209_v48 = vadd.f32 %v193_v45, %v145_v38  ;;  %1528 = vrcp.f32 %v512_v43  ;;  %v208_v49 = vadd.f32 %v191_v46, %v144_v42 }
  0xdb   :  { %v1521_v52 = vpop.eup %1520  ;;  %v498_v53 = vld [vmem:[#allocation3 + $0x58] sm:$0xff]  ;;  %1530 = vrcp.f32 %v508_v44  ;;  %v497_v7 = vld [vmem:[#allocation3 + $0x50] sm:$0xff] }
  0xdc   :  { %226 = vst.msk [vmem:[#allocation3 + $0x78] sm:$0xff] %vm97_vm0, %v209_v48  ;;  %558 = vperm.xlu1 %1469, %v1521_v52   ;;  %225 = vst.msk [vmem:[#allocation3 + $0x70] sm:$0xff] %vm97_vm0, %v208_v49  ;;  %v514_v54 = vmax.f32 %v498_v53, 1.0  ;;  %v1523_v56 = vpop.eup %1522  ;;  %v513_v9 = vmax.f32 %v497_v7, 1.0 }
  0xdd   :  { %v1525_v63 = vpop.eup %1524 }
  0xde   :  { %1532 = vrcp.f32 %v514_v54 }
  0xdf   :  { %v500_v60 = vld [vmem:[#allocation3 + $0x68] sm:$0xff]  ;;  %1534 = vrcp.f32 %v509_v55  ;;  %v1527_v6 = vpop.eup %1526  ;;  %v499_v11 = vld [vmem:[#allocation3 + $0x60] sm:$0xff] }
  0xe0   :  { %563 = vperm.xlu1 %1469, %v1523_v56   ;;  %v516_v61 = vmax.f32 %v500_v60, 1.0  ;;  %v515_v13 = vmax.f32 %v499_v11, 1.0 }
  0xe2   :  { %1536 = vrcp.f32 %v516_v61 }
  0xe3   :  { %v502_v3 = vld [vmem:[#allocation3 + $0x78] sm:$0xff]  ;;  %1538 = vrcp.f32 %v510_v62  ;;  %v501_v15 = vld [vmem:[#allocation3 + $0x70] sm:$0xff] }
  0xe4   :  { %568 = vperm.xlu1 %1469, %v1525_v63   ;;  %v518_v4 = vmax.f32 %v502_v3, 1.0  ;;  %v517_v17 = vmax.f32 %v501_v15, 1.0 }
  0xe6   :  { %1540 = vrcp.f32 %v518_v4 }
  0xe7   :  { %v1529_v8 = vpop.eup %1528  ;;  %1542 = vrcp.f32 %v511_v5 }
  0xe8   :  { %573 = vperm.xlu1 %1469, %v1527_v6   ;;  %598 = vperm.xlu0 %1468, %v1529_v8   ;;  %v1531_v10 = vpop.eup %1530  ;;  %1544 = vrcp.f32 %v513_v9 }
  0xe9   :  { %1546 = vrcp.f32 %v515_v13 }
  0xea   :  { %1548 = vrcp.f32 %v517_v17 }
  0xeb   :  { %v1533_v12 = vpop.eup %1532 }
  0xec   :  { %578 = vperm.xlu1 %1469, %v1531_v10   ;;  %608 = vperm.xlu0 %1468, %v1533_v12   ;;  %v1535_v14 = vpop.eup %1534 }
  0xef   :  { %v1537_v16 = vpop.eup %1536 }
  0xf0   :  { %583 = vperm.xlu1 %1469, %v1535_v14   ;;  %618 = vperm.xlu0 %1468, %v1537_v16   ;;  %v1539_v18 = vpop.eup %1538 }
  0xf3   :  { %v1541_v21 = vpop.eup %1540 }
  0xf4   :  { %588 = vperm.xlu1 %1469, %v1539_v18   ;;  %628 = vperm.xlu0 %1468, %v1541_v21   ;;  %v1543_v22 = vpop.eup %1542  ;;  %v1507_v21 = vld [vmem:[#allocation9 + $0x28] sm:$0xff]  }
  0xf5   :  { %v1545_v23 = vpop.eup %1544 }
  0xf6   :  { %v1547_v25 = vpop.eup %1546 }
  0xf7   :  { %v1549_v26 = vpop.eup %1548 }
  0xf8   :  { %593 = vperm.xlu1 %1469, %v1543_v22   ;;  %v1508_v22 = vld [vmem:[#allocation9 + $0x30] sm:$0xff]  }
  0xfc   :  { %603 = vperm.xlu1 %1469, %v1545_v23   ;;  %v1509_v23 = vld [vmem:[#allocation9 + $0x38] sm:$0xff]  }
 0x100   :  { %613 = vperm.xlu1 %1469, %v1547_v25  }
 0x104   :  { %623 = vperm.xlu1 %1469, %v1549_v26  }
 0x114   :  { %v1365_v27 = vpop.f32.mrf.mxu0 }
 0x116   :  { %v389_v28 = vpop.f32.mrf.mxu0 }
 0x118   :  { %v1366_v29 = vpop.f32.mrf.mxu0 }
 0x11a   :  { %v392_v30 = vpop.f32.mrf.mxu0 }
 0x11c   :  { %v1369_v31 = vpop.f32.mrf.mxu0 }
 0x11e   :  { %v405_v32 = vpop.f32.mrf.mxu0 }
 0x120   :  { %v1370_v36 = vpop.f32.mrf.mxu0 }
 0x122   :  { %v408_v43 = vpop.f32.mrf.mxu0 }
 0x124   :  { %v1373_v46 = vpop.f32.mrf.mxu0 }
 0x126   :  { %v421_v50 = vpop.f32.mrf.mxu0 }
 0x128   :  { %v1374_v54 = vpop.f32.mrf.mxu0 }
 0x12a   :  { %v424_v58 = vpop.f32.mrf.mxu0 }
 0x12c   :  { %v1377_v63 = vpop.f32.mrf.mxu0 }
 0x12e   :  { %v437_v2 = vpop.f32.mrf.mxu0 }
 0x130   :  { %v1378_v7 = vpop.f32.mrf.mxu0 }
 0x132   :  { %v440_v12 = vpop.f32.mrf.mxu0 }
 0x153   :  { %v554_v33 = vpop.permute.xlu0 %553 }
 0x154   :  { %v631_v40 = vmul.f32 %v554_v33, %v389_v28 }
 0x157   :  { %v559_v38 = vpop.permute.xlu1 %558 }
 0x158   :  { %v632_v42 = vmul.f32 %v559_v38, %v392_v30 }
 0x15a   :  { %v647_v44 = vpack.c.bf16 %v632_v42, %v631_v40 }
 0x15b   :  { %v564_v45 = vpop.permute.xlu1 %563 }
 0x15c   :  { %1395 = vmatprep.mubr.bf16.mxu1 %v647_v44  ;;  %v633_v48 = vmul.f32 %v1365_v27, %v564_v45 }
 0x15f   :  { %v569_v47 = vpop.permute.xlu1 %568 }
 0x160   :  { %v634_v49 = vmul.f32 %v1366_v29, %v569_v47  ;;  %v1809_v29 = vld [vmem:[%s1837_s4] ss:$0 sm:$0xff]  ;;  %s1666_s4 = smov [#allocation12]  }
 0x161   :  { %s1165_s13 = sshll.u32 %s1666_s4, 4  ;;  %s1166_s13 = int_to_ptr.vmem [resolvable:$true] %s1165_s13 }
 0x162   :  { %v648_v52 = vpack.c.bf16 %v634_v49, %v633_v48  ;;  %s1630_s14 = scalar_lea.vmem %s1166_s13, 1024  ;;  %p1635_p7 = scmp.lt.s32.totalorder %s1166_s13, %s1166_s13 }
 0x163   :  { %v574_v53 = vpop.permute.xlu1 %573  ;;  %v599_v61 = vpop.permute.xlu0 %598  ;;  %p1631_p6 = scmp.ne.s32.totalorder %s1166_s13, %s1630_s14  ;;  %p1636_p8 = scmp.lt.s32.totalorder %s1630_s14, %s1630_s14 }
 0x164   :  { %1396 = vmatmul.mubr.bf16.vlgmr.msra.gmra.mxu1 %v648_v52  ;;  %v635_v56 = vmul.f32 %v574_v53, %v405_v32  ;;  %v640_v5 = vmul.f32 %v599_v61, %v424_v58 }
 0x165   :  { %1451 = vmatpush3.bf16.msra.mxu1 %v1742_v35  ;;  %p1637_p9 = por %p1636_p8, %p1635_p7 }
 0x166   :  { %1444 = vmatprep.subr.bf16.mxu1 %v1744_v37 }
 0x167   :  { %v579_v55 = vpop.permute.xlu1 %578  ;;  %v609_v3 = vpop.permute.xlu0 %608  ;;  %p1638_p10 = pnand %p1637_p9, %p1631_p6 }
 0x168   :  { %v636_v57 = vmul.f32 %v579_v55, %v408_v43  ;;  %v642_v10 = vmul.f32 %v1374_v54, %v609_v3 }
 0x169   :  { %1452 = vmatpush3.bf16.msra.mxu1 %v1744_v37 }
 0x16a   :  { %v649_v60 = vpack.c.bf16 %v636_v57, %v635_v56  ;;  %1445 = vmatprep.subr.bf16.mxu1 %v1749_v39 }
 0x16b   :  { %v584_v62 = vpop.permute.xlu1 %583  ;;  %v619_v8 = vpop.permute.xlu0 %618 }
 0x16c   :  { %1399 = vmatprep.mubr.bf16.mxu1 %v649_v60  ;;  %v637_v0 = vmul.f32 %v1369_v31, %v584_v62  ;;  %v644_v14 = vmul.f32 %v619_v8, %v440_v12 }
 0x16d   :  { %1453 = vmatpush3.bf16.msra.mxu1 %v1749_v39 }
 0x16e   :  { %1446 = vmatprep.subr.bf16.mxu1 %v1754_v41 }
 0x16f   :  { %v589_v35 = vpop.permute.xlu1 %588  ;;  %v629_v16 = vpop.permute.xlu0 %628 }
 0x170   :  { %v638_v1 = vmul.f32 %v1370_v36, %v589_v35  ;;  %v646_v18 = vmul.f32 %v1378_v7, %v629_v16 }
 0x171   :  { %1454 = vmatpush3.bf16.msra.mxu1 %v1754_v41 }
 0x172   :  { %v650_v4 = vpack.c.bf16 %v638_v1, %v637_v0  ;;  %1447 = vmatprep.subr.bf16.mxu1 %v1768_v24 }
 0x173   :  { %v594_v37 = vpop.permute.xlu1 %593 }
 0x174   :  { %v639_v6 = vmul.f32 %v594_v37, %v421_v50  ;;  %1400 = vmatmul.mubr.bf16.gmra.mxu1 %v650_v4 }
 0x175   :  { %1455 = vmatpush3.bf16.msra.mxu1 %v1768_v24 }
 0x176   :  { %v651_v39 = vpack.c.bf16 %v640_v5, %v639_v6  ;;  %1448 = vmatprep.subr.bf16.mxu1 %v1774_v34 }
 0x177   :  { %v604_v9 = vpop.permute.xlu1 %603 }
 0x178   :  { %v641_v11 = vmul.f32 %v1373_v46, %v604_v9  ;;  %1403 = vmatprep.mubr.bf16.mxu1 %v651_v39 }
 0x179   :  { %1456 = vmatpush3.bf16.msra.mxu1 %v1774_v34  ;;  %v1506_v34 = vld [vmem:[#allocation9 + $0x20] sm:$0xff]  }
 0x17a   :  { %v652_v41 = vpack.c.bf16 %v642_v10, %v641_v11  ;;  %1449 = vmatprep.subr.bf16.mxu1 %v1780_v51 }
 0x17b   :  { %v614_v13 = vpop.permute.xlu1 %613 }
 0x17c   :  { %v643_v15 = vmul.f32 %v614_v13, %v437_v2  ;;  %1404 = vmatmul.mubr.bf16.gmra.mxu1 %v652_v41 }
 0x17d   :  { %1457 = vmatpush3.bf16.msra.mxu1 %v1780_v51 }
 0x17e   :  { %v653_v24 = vpack.c.bf16 %v644_v14, %v643_v15  ;;  %1450 = vmatprep.subr.bf16.mxu1 %v1786_v59 }
 0x17f   :  { %v624_v17 = vpop.permute.xlu1 %623 }
 0x180   :  { %v645_v19 = vmul.f32 %v1377_v63, %v624_v17  ;;  %1407 = vmatprep.mubr.bf16.mxu1 %v653_v24 }
 0x181   :  { %1458 = vmatpush3.bf16.msra.mxu1 %v1786_v59 }
 0x182   :  { %v654_v20 = vpack.c.bf16 %v646_v18, %v645_v19 }
 0x184   :  { %1408 = vmatmul.mubr.bf16.gmra.mxu1 %v654_v20 }
 0x185   :  { %1435 = vmatprep.mubr.bf16.mxu1 %v1506_v34 }
 0x18c   :  { %1436 = vmatmul.mubr.bf16.vlgmr.msra.gmra.mxu1 %v1507_v21 }
 0x18d   :  { %1439 = vmatprep.mubr.bf16.mxu1 %v1508_v22 }
 0x18e   :  { %v1429_v51 = vpop.f32.mrf.mxu0 }
 0x190   :  { %v978_v25 = vpop.f32.mrf.mxu0 }
 0x192   :  { %v1430_v27 = vpop.f32.mrf.mxu0 }
 0x194   :  { %1440 = vmatmul.mubr.bf16.gmra.mxu1 %v1509_v23  ;;  %v981_v32 = vpop.f32.mrf.mxu0 }
 0x196   :  { %v1433_v44 = vpop.f32.mrf.mxu0 }
 0x198   :  { %v994_v52 = vpop.f32.mrf.mxu0 }
 0x19a   :  { %v1434_v55 = vpop.f32.mrf.mxu0 }
 0x19c   :  { %v997_v61 = vpop.f32.mrf.mxu0 }
 0x224   :  { %v1397_v26 = vpop.f32.mrf.mxu1 }
 0x225   :  { %v987_v28 = vadd.f32 %v1429_v51, %v1397_v26 }
 0x226   :  { %v785_v59 = vpop.f32.mrf.mxu1 }
 0x227   :  { %v979_v30 = vadd.f32 %v978_v25, %v785_v59  ;;  %v1050_v33 = vadd.f32 %v1809_v29, %v987_v28 }
 0x228   :  { %v1398_v31 = vpop.f32.mrf.mxu1 }
 0x229   :  { %v990_v36 = vadd.f32 %v1430_v27, %v1398_v31  ;;  %v1048_v40 = vadd.f32 %v1809_v29, %v979_v30  ;;  %v1066_v45 = vmax.f32 %v1050_v33, 0.0 }
 0x22a   :  { %v788_v38 = vpop.f32.mrf.mxu1 }
 0x22b   :  { %v1051_v42 = vadd.f32 %v1809_v29, %v990_v36  ;;  %v982_v43 = vadd.f32 %v981_v32, %v788_v38  ;;  %v1064_v48 = vmax.f32 %v1048_v40, 0.0 }
 0x22d   :  { %v1067_v46 = vmax.f32 %v1051_v42, 0.0  ;;  %v1049_v47 = vadd.f32 %v1809_v29, %v982_v43 }
 0x22f   :  { %v1260_v49 = vpack.c.bf16 %v1067_v46, %v1066_v45  ;;  %v1065_v50 = vmax.f32 %v1049_v47, 0.0 }
 0x231   :  { %1292 = vst [vmem:[#allocation12 + $0x8] sm:$0xff] %v1260_v49   ;;  %v1255_v53 = vpack.c.bf16 %v1065_v50, %v1064_v48 }
 0x233   :  { %1256 = vst [vmem:[#allocation12] sm:$0xff] %v1255_v53  }
 0x234   :  { %v1401_v54 = vpop.f32.mrf.mxu1 }
 0x235   :  { %v1003_v56 = vadd.f32 %v1433_v44, %v1401_v54 }
 0x236   :  { %v801_v57 = vpop.f32.mrf.mxu1 }
 0x237   :  { %v995_v58 = vadd.f32 %v994_v52, %v801_v57  ;;  %v1054_v62 = vadd.f32 %v1809_v29, %v1003_v56 }
 0x238   :  { %v1402_v60 = vpop.f32.mrf.mxu1 }
 0x239   :  { %v1006_v63 = vadd.f32 %v1434_v55, %v1402_v60  ;;  %v1052_v0 = vadd.f32 %v1809_v29, %v995_v58  ;;  %v1070_v4 = vmax.f32 %v1054_v62, 0.0 }
 0x23a   :  { %v804_v35 = vpop.f32.mrf.mxu1 }
 0x23b   :  { %v1055_v1 = vadd.f32 %v1809_v29, %v1006_v63  ;;  %v998_v2 = vadd.f32 %v997_v61, %v804_v35  ;;  %v1068_v7 = vmax.f32 %v1052_v0, 0.0 }
 0x23c   :  { %v1405_v3 = vpop.f32.mrf.mxu1 }
 0x23d   :  { %v1071_v37 = vmax.f32 %v1055_v1, 0.0  ;;  %v1053_v5 = vadd.f32 %v1809_v29, %v998_v2 }
 0x23e   :  { %v817_v6 = vpop.f32.mrf.mxu1 }
 0x23f   :  { %v1270_v39 = vpack.c.bf16 %v1071_v37, %v1070_v4  ;;  %v1069_v8 = vmax.f32 %v1053_v5, 0.0 }
 0x240   :  { %v1406_v9 = vpop.f32.mrf.mxu1 }
 0x241   :  { %1294 = vst [vmem:[#allocation12 + $0x18] sm:$0xff] %v1270_v39   ;;  %v1265_v10 = vpack.c.bf16 %v1069_v8, %v1068_v7 }
 0x242   :  { %v820_v11 = vpop.f32.mrf.mxu1 }
 0x243   :  { %1293 = vst [vmem:[#allocation12 + $0x10] sm:$0xff] %v1265_v10  }
 0x244   :  { %v1409_v12 = vpop.f32.mrf.mxu1 }
 0x246   :  { %v833_v41 = vpop.f32.mrf.mxu1 }
 0x248   :  { %v1410_v13 = vpop.f32.mrf.mxu1 }
 0x24a   :  { %v836_v14 = vpop.f32.mrf.mxu1 }
 0x24c   :  { %v1437_v15 = vpop.f32.mrf.mxu1 }
 0x24d   :  { %v1019_v16 = vadd.f32 %v1437_v15, %v1405_v3 }
 0x24e   :  { %v1010_v24 = vpop.f32.mrf.mxu1 }
 0x24f   :  { %v1011_v17 = vadd.f32 %v1010_v24, %v817_v6  ;;  %v1058_v19 = vadd.f32 %v1809_v29, %v1019_v16 }
 0x250   :  { %v1438_v18 = vpop.f32.mrf.mxu1 }
 0x251   :  { %v1022_v34 = vadd.f32 %v1438_v18, %v1406_v9  ;;  %v1056_v21 = vadd.f32 %v1809_v29, %v1011_v17  ;;  %v1074_v25 = vmax.f32 %v1058_v19, 0.0 }
 0x252   :  { %v1013_v20 = vpop.f32.mrf.mxu1 }
 0x253   :  { %v1059_v22 = vadd.f32 %v1809_v29, %v1022_v34  ;;  %v1014_v23 = vadd.f32 %v1013_v20, %v820_v11  ;;  %v1072_v30 = vmax.f32 %v1056_v21, 0.0 }
 0x254   :  { %v1441_v51 = vpop.f32.mrf.mxu1 }
 0x255   :  { %v1075_v26 = vmax.f32 %v1059_v22, 0.0  ;;  %v1057_v27 = vadd.f32 %v1809_v29, %v1014_v23  ;;  %v1035_v28 = vadd.f32 %v1441_v51, %v1409_v12 }
 0x256   :  { %v1026_v59 = vpop.f32.mrf.mxu1 }
 0x257   :  { %v1280_v31 = vpack.c.bf16 %v1075_v26, %v1074_v25  ;;  %v1073_v32 = vmax.f32 %v1057_v27, 0.0  ;;  %v1027_v33 = vadd.f32 %v1026_v59, %v833_v41  ;;  %v1062_v40 = vadd.f32 %v1809_v29, %v1035_v28 }
 0x258   :  { %v1442_v36 = vpop.f32.mrf.mxu1 }
 0x259   :  { %1296 = vst [vmem:[#allocation12 + $0x28] sm:$0xff] %v1280_v31   ;;  %v1275_v38 = vpack.c.bf16 %v1073_v32, %v1072_v30  ;;  %v1038_v42 = vadd.f32 %v1442_v36, %v1410_v13  ;;  %v1060_v44 = vadd.f32 %v1809_v29, %v1027_v33  ;;  %v1078_v47 = vmax.f32 %v1062_v40, 0.0 }
 0x25a   :  { %v1029_v43 = vpop.f32.mrf.mxu1 }
 0x25b   :  { %1295 = vst [vmem:[#allocation12 + $0x20] sm:$0xff] %v1275_v38   ;;  %v1063_v45 = vadd.f32 %v1809_v29, %v1038_v42  ;;  %v1030_v46 = vadd.f32 %v1029_v43, %v836_v14  ;;  %v1076_v50 = vmax.f32 %v1060_v44, 0.0 }
 0x25d   :  { %v1079_v48 = vmax.f32 %v1063_v45, 0.0  ;;  %v1061_v49 = vadd.f32 %v1809_v29, %v1030_v46 }
 0x25f   :  { %v1290_v52 = vpack.c.bf16 %v1079_v48, %v1078_v47  ;;  %v1077_v53 = vmax.f32 %v1061_v49, 0.0 }
 0x261   :  { %1298 = vst [vmem:[#allocation12 + $0x38] sm:$0xff] %v1290_v52   ;;  %v1285_v54 = vpack.c.bf16 %v1077_v53, %v1076_v50 }
 0x263   :  { %1297 = vst [vmem:[#allocation12 + $0x30] sm:$0xff] %v1285_v54  }
 0x264   :  { %1641 = shalt.err (!%p1638_p10)
}
 0x265   :  { %1171 = dma.vmem_to_hbm [thread:$0]  %s1166_s13, 1024, %s1838_s5, [#allocation6], %s1660_s23, %s1660_s23, %s1661_s24  }
 0x266   :  { %1656 = dma.done.wait [#allocation6], 1024  }
 0x267   :  { %1657 = vsyncadd [#allocation6], 4294966272 }
 0x268   :  { %1175 = vsyncpa [#allocation5], 1 }
 0x269   :  { %1176 = vsyncpa [#allocation8], 1 }
 0x26a   :  { %1177 = vsyncpa [#allocation11], 1 }
 0x26b   :  { %1178 = vsyncpa [#allocation6], 1 }

</bundles_post_ra>
